<compile_context>
chip_gen: v5e
topology: v5e:2x2
jax: 0.10.0
libtpu: 0.0.40
codegen_flags: <defaults>
</compile_context>

<pallas_src>
import jax
import jax.numpy as jnp
from jax.experimental import pallas as pl
from jax.experimental.pallas import tpu as pltpu  # noqa: F401  (TPU backend)

RANK_MODE = "rank"
PER_SEQ_LOG_PROB_MODE = "per_seq_log_prob"

# One vreg worth of data: (8 sublanes, 128 lanes) f32.
_PAD_ROWS, _PAD_LANES = 8, 128


# ----------------------------- Pallas kernel -------------------------------

def _log_kernel(p_ref, o_ref):
    # Elementwise natural log on a single lane-dense (8,128) vreg (EUP path).
    o_ref[...] = jnp.log(p_ref[...])


def _log_probs_pallas(probs_padded: jax.Array) -> jax.Array:
    """probs_padded: (8, 128) f32 -> log(probs_padded): (8, 128) f32.

    Single invocation (no grid), full-array blocks, default VMEM placement:
    one DMA in, one DMA out, one unmasked vector store.
    """
    return pl.pallas_call(
        _log_kernel,
        out_shape=jax.ShapeDtypeStruct(probs_padded.shape, jnp.float32),
    )(probs_padded)


# --------------------------- Module-equivalent ------------------------------

class FakeSeq2SlateTransformerNetPallas:
    """JAX/Pallas re-implementation of FakeSeq2SlateTransformerNet.forward."""

    def __init__(self):
        # nn.Linear(1, 1): deterministic init (unused by forward, kept for parity).
        key = jax.random.PRNGKey(0)
        kw, kb = jax.random.split(key)
        bound = 1.0  # 1/sqrt(fan_in) with fan_in = 1
        self.fake_parms_w = jax.random.uniform(kw, (1, 1), jnp.float32, -bound, bound)
        self.fake_parms_b = jax.random.uniform(kb, (1,), jnp.float32, -bound, bound)

        # Constant ranked indices.  Returned directly (no Pallas copy of a
        # 24-byte constant — that was pure dispatch/DMA overhead).
        # TODO(synk): torch returns int64 (.long()); kept as int32 on TPU.
        self._ranked_tgt_out_idx = jnp.array([[2, 3], [3, 2], [2, 3]], dtype=jnp.int32)

        # Per-sequence probabilities, pre-padded once into a lane-dense
        # (8, 128) slab.  The 3 real values sit in lanes 0..2 of sublane 0;
        # padding is 1.0 so log(pad) = 0 (no -inf noise in the unused region).
        self._batch = 3
        probs = jnp.array([0.4, 0.3, 0.7], dtype=jnp.float32)
        padded = jnp.ones((_PAD_ROWS, _PAD_LANES), dtype=jnp.float32)
        self._per_seq_probs_padded = padded.at[0, : self._batch].set(probs)

    def forward(self, mode: str, greedy=None):
        assert mode in (RANK_MODE, PER_SEQ_LOG_PROB_MODE)
        if mode == RANK_MODE:
            assert greedy
            return {"ranked_tgt_out_idx": self._ranked_tgt_out_idx}

        # PER_SEQ_LOG_PROB_MODE: log of the probabilities via the Pallas kernel,
        # then unpad back to the module's (batch, 1) shape.
        log_padded = _log_probs_pallas(self._per_seq_probs_padded)
        log_probs = log_padded[0, : self._batch][:, None]  # (3, 1)
        return {"log_probs": log_probs}


# --------------------------------- main -------------------------------------

if __name__ == "__main__":
    net = FakeSeq2SlateTransformerNetPallas()

    # PER_SEQ_LOG_PROB_MODE: log of [0.4, 0.3, 0.7], shape (3, 1)
    out_lp = net.forward(PER_SEQ_LOG_PROB_MODE)["log_probs"]
    out_lp = jax.block_until_ready(out_lp)
    expected_lp = jnp.log(jnp.array([0.4, 0.3, 0.7], dtype=jnp.float32))[:, None]
    assert out_lp.shape == (3, 1) and out_lp.dtype == jnp.float32
    assert jnp.allclose(out_lp, expected_lp, atol=1e-6, rtol=1e-6)

    # RANK_MODE (greedy=True): constant ranked indices, shape (3, 2)
    out_idx = net.forward(RANK_MODE, greedy=True)["ranked_tgt_out_idx"]
    out_idx = jax.block_until_ready(out_idx)
    expected_idx = jnp.array([[2, 3], [3, 2], [2, 3]], dtype=jnp.int32)
    assert out_idx.shape == (3, 2)
    assert jnp.array_equal(out_idx, expected_idx)

    print("KERNEL_OK")
</pallas_src>

<mosaic_0001>
module attributes {stable_mosaic.version = 11 : i64} {
  func.func @_log_kernel(%arg0: memref<8x128xf32, #tpu.memory_space<vmem>>, %arg1: memref<8x128xf32, #tpu.memory_space<vmem>>) attributes {dimension_semantics = [], scalar_prefetch = 0 : i64, scratch_operands = 0 : i64, tpu.core_type = #tpu.core_type<tc>} {
    %c0 = arith.constant 0 : index
    %c0_0 = arith.constant 0 : index
    %0 = vector.load %arg0[%c0, %c0_0] : memref<8x128xf32, #tpu.memory_space<vmem>>, vector<8x128xf32>
    %1 = math.log %0 : vector<8x128xf32>
    %c0_1 = arith.constant 0 : index
    %c0_2 = arith.constant 0 : index
    %2 = vector.load %arg1[%c0_1, %c0_2] : memref<8x128xf32, #tpu.memory_space<vmem>>, vector<8x128xf32>
    tpu.vector_store %arg1[%c0_1, %c0_2], %1 {strides = array<i32>} : memref<8x128xf32, #tpu.memory_space<vmem>>, vector<8x128xf32>,
    return
  }
}

</mosaic_0001>

<bundles_post_ra>
// kernel: tpu_custom_call.1
= control target key start
LH: loop header
LB: loop body
LE: loop exit
PB: predicated region body
PF: predicated region fallthrough
CT: control target
= control target key end

     0   :  { %6 = vsyncpa [#allocation3], 0  ;;  %s118_s0 = inlined_call_operand.hbm [shape: f32[8,128], index: 0, kind: input, shape index: {}]   ;;  %s119_s1 = inlined_call_operand.hbm [shape: f32[8,128], index: 1, kind: output, shape index: {}]  }
   0x1   :  { %7 = vsyncpa [#allocation4], 0  ;;  %s13_s8 = sshll.u32 %s118_s0, 4  ;;  %s100_s9 = smov [#allocation2]   ;;  %s14_s8 = int_to_ptr.hbm [resolvable:$true] %s13_s8 }
   0x2   :  { %s15_s10 = sshll.u32 %s100_s9, 4  ;;  %s16_s10 = int_to_ptr.vmem [resolvable:$true] %s15_s10 }
   0x3   :  { %18 = dma.hbm_to_vmem [thread:$0]  %s14_s8, 128, %s16_s10, [#allocation3]  }
   0x4   :  { %96 = dma.done.wait [#allocation3], 128  }
   0x5   :  { %97 = vsyncadd [#allocation3], 4294967168  ;;  %v23_v0 = vld [vmem:[#allocation2] sm:$0xff]  ;;  %s101_s11 = smov [#allocation5]   ;;  %s34_s15 = sshll.u32 %s119_s1, 4  ;;  %s35_s15 = int_to_ptr.hbm [resolvable:$true] %s34_s15 }
   0x6   :  { %46 = vlog2.f32 %v23_v0  ;;  %s32_s12 = sshll.u32 %s101_s11, 4  ;;  %s33_s12 = int_to_ptr.vmem [resolvable:$true] %s32_s12 }
   0xc   :  { %v47_v1 = vpop.eup %46 }
   0xd   :  { %v25_v2 = vmul.f32 0.6931472, %v47_v1 }
   0xf   :  { %26 = vst [vmem:[#allocation5] sm:$0xff] %v25_v2 }
  0x10   :  { %37 = dma.vmem_to_hbm [thread:$0]  %s33_s12, 128, %s35_s15, [#allocation4]  }
  0x11   :  { %98 = dma.done.wait [#allocation4], 128  }
  0x12   :  { %99 = vsyncadd [#allocation4], 4294967168 }
  0x13   :  { %42 = vsyncpa [#allocation3], 1 }
  0x14   :  { %43 = vsyncpa [#allocation4], 1 }

</bundles_post_ra>
